<compile_context>
chip_gen: v6e
topology: v6e:2x2x1
jax: 0.10.0
libtpu: 0.0.40
codegen_flags: <defaults>
</compile_context>

<pallas_src>
import jax
import jax.numpy as jnp
from jax import lax
from jax.experimental import pallas as pl
from jax.experimental.pallas import tpu as pltpu


def _round_up(x, m):
    return ((x + m - 1) // m) * m


def _chip_defaults():
    """Per-chip tiling / scoped-VMEM budgets (best-effort detection, safe fallback)."""
    kind = ""
    try:
        kind = jax.devices()[0].device_kind.lower()
    except Exception:
        pass
    if "v7" in kind:
        # 64 MiB physical VMEM, 2 TensorCores share the parallel grid axes.
        return dict(t_default=512, vmem_budget=40 << 20, weight_budget=10 << 20,
                    min_grid_steps=8)
    # v5e / v6e: 128 MiB VMEM, 1 TensorCore -> large tiles, large resident weight.
    return dict(t_default=1024, vmem_budget=80 << 20, weight_budget=32 << 20,
                min_grid_steps=1)


def _mlp_proj_kernel(x_ref, w_ref, b_ref, o_ref):
    # x_ref: (1, C, t)   channel-major token tile (no wrapper-side transpose)
    # w_ref: (C, te)     weight tile, resident across the inner HW grid axis
    # b_ref: (1, te)     bias tile
    # o_ref: (1, t, te)  output tile
    x = x_ref[0]                                             # (C, t)
    # Contract C (dim 0) of the token tile with C (dim 0) of the weight -> (t, te).
    # TODO(synk): verify via pl.lower_as_mlir that Mosaic maps this transposed-LHS contraction
    # straight onto the MXU (no per-step XLU vxpose of the (C, t) tile) before scaling C.
    acc = lax.dot_general(
        x, w_ref[...],
        dimension_numbers=(((0,), (0,)), ((), ())),
        preferred_element_type=jnp.float32,
    )
    o_ref[0] = (acc + b_ref[...]).astype(o_ref.dtype)


@jax.jit
def mlp_forward(x_nchw, weight, bias):
    """Pallas equivalent of MLP.forward.

    x_nchw: (B, C, H, W)
    weight: (E, C)   -- PyTorch nn.Linear layout (out_features, in_features)
    bias:   (E,)
    returns (B, H*W, E) in x's dtype.
    """
    B, C, H, W = x_nchw.shape
    E = weight.shape[0]
    HW = H * W

    cfg = _chip_defaults()

    # --- layout plumbing (cheap; the expensive transpose lives inside the matmul) ---
    x_bchw = x_nchw.reshape(B, C, HW)        # contiguous reshape: free
    w_ke = weight.T                          # (C, E): one small transform, outside the kernel
    b_2d = bias.reshape(1, E)

    x_item = jnp.dtype(x_nchw.dtype).itemsize
    w_item = jnp.dtype(w_ke.dtype).itemsize
    b_item = jnp.dtype(b_2d.dtype).itemsize
    o_item = x_item                          # output dtype == x dtype

    # ---- E tiling: keep the weight tile resident; only split E if the weight is too big ----
    if C * E * w_item <= cfg["weight_budget"]:
        te, n_e = E, 1                       # full-dim block: legal for any E (even E % 128 != 0)
    else:
        te = max(128, (cfg["weight_budget"] // (C * w_item)) // 128 * 128)
        n_e = pl.cdiv(E, te)                 # ragged E tail handled by edge blocks

    # ---- HW tiling ----
    t = min(cfg["t_default"], _round_up(HW, 128))
    # Dual-TC chips (v7x): make sure there are enough parallel grid steps for both cores.
    while t > 256 and B * n_e * pl.cdiv(HW, t) < cfg["min_grid_steps"]:
        t = max(256, ((t // 2) // 128) * 128)

    # ---- honest VMEM accounting (actual buffer counts, actual dtypes) ----
    def vmem_need(t_):
        return (2 * C * t_ * x_item          # x tile, double-buffered
                + 2 * t_ * te * o_item       # out tile, double-buffered
                + 1 * C * te * w_item        # weight tile, single-buffered (Buffered(1))
                + 1 * te * b_item)           # bias tile, single-buffered (Buffered(1))

    while t > 128 and vmem_need(t) > cfg["vmem_budget"] - (4 << 20):
        t -= 128                             # shrink the tile instead of lying about the request
    t = max(t, 128)
    vmem_limit = int(min(cfg["vmem_budget"],
                         max(32 << 20, vmem_need(t) + (8 << 20))))

    n_hw = pl.cdiv(HW, t)
    grid = (B, n_e, n_hw)                    # HW innermost -> weight tile resident across HW steps

    out = pl.pallas_call(
        _mlp_proj_kernel,
        out_shape=jax.ShapeDtypeStruct((B, HW, E), x_nchw.dtype),
        grid_spec=pltpu.PrefetchScalarGridSpec(
            num_scalar_prefetch=0,
            grid=grid,
            in_specs=[
                # x tile in native (B, C, HW) layout.
                pl.BlockSpec((1, C, t), lambda b, e, j: (b, 0, j)),
                # Weight / bias: constant along the inner HW axis -> single buffer.
                pl.BlockSpec((C, te), lambda b, e, j: (0, e),
                             pipeline_mode=pl.Buffered(1)),
                pl.BlockSpec((1, te), lambda b, e, j: (0, e),
                             pipeline_mode=pl.Buffered(1)),
            ],
            out_specs=pl.BlockSpec((1, t, te), lambda b, e, j: (b, j, e)),
        ),
        compiler_params=pltpu.CompilerParams(
            dimension_semantics=("parallel", "parallel", "parallel"),
            vmem_limit_bytes=vmem_limit,
        ),
    )(x_bchw, w_ke, b_2d)

    return out                               # already (B, HW, E): no slicing pass


def _reference(x, weight, bias):
    B, C, H, W = x.shape
    return jnp.transpose(x.reshape(B, C, H * W), (0, 2, 1)) @ weight.T + bias


if __name__ == "__main__":
    key = jax.random.PRNGKey(0)
    kx, kw, kb, kx2 = jax.random.split(key, 4)

    # Small, self-consistent shapes: input_dim = C = 32, embed_dim = E = 64, 16x16 spatial, batch 2.
    B, C, H, W = 2, 32, 16, 16
    E = 64

    x = jax.random.normal(kx, (B, C, H, W), dtype=jnp.float32)
    # Deterministic init mimicking nn.Linear's uniform(-1/sqrt(fan_in), 1/sqrt(fan_in)).
    bound = 1.0 / jnp.sqrt(jnp.float32(C))
    weight = jax.random.uniform(kw, (E, C), dtype=jnp.float32, minval=-bound, maxval=bound)
    bias = jax.random.uniform(kb, (E,), dtype=jnp.float32, minval=-bound, maxval=bound)

    out = jax.block_until_ready(mlp_forward(x, weight, bias))
    assert out.shape == (B, H * W, E)
    assert jnp.allclose(out, _reference(x, weight, bias), atol=1e-5, rtol=1e-5)

    # Second check with a ragged spatial extent (HW = 63, smaller than one token tile)
    # to exercise the no-padding edge-block path.
    H2, W2 = 7, 9
    x2 = jax.random.normal(kx2, (B, C, H2, W2), dtype=jnp.float32)
    out2 = jax.block_until_ready(mlp_forward(x2, weight, bias))
    assert out2.shape == (B, H2 * W2, E)
    assert jnp.allclose(out2, _reference(x2, weight, bias), atol=1e-5, rtol=1e-5)

    print("KERNEL_OK")
</pallas_src>

<mosaic_0001>
module attributes {stable_mosaic.version = 11 : i64} {
  func.func @_mlp_proj_kernel(%arg0: i32, %arg1: i32, %arg2: i32, %arg3: memref<1x32x256xf32, #tpu.memory_space<vmem>>, %arg4: memref<32x64xf32, #tpu.memory_space<vmem>>, %arg5: memref<1x64xf32, #tpu.memory_space<vmem>>, %arg6: memref<1x256x64xf32, #tpu.memory_space<vmem>>) attributes {dimension_semantics = [#tpu.dimension_semantics<parallel>, #tpu.dimension_semantics<parallel>, #tpu.dimension_semantics<parallel>], iteration_bounds = array<i64: 2, 1, 1>, scalar_prefetch = 0 : i64, scratch_operands = 0 : i64, tpu.core_type = #tpu.core_type<tc>, window_params = [{transform_indices = @transform_0, window_bounds = array<i64: 1, 32, 256>}, {pipeline_mode = #tpu.pipeline_mode<synchronous>, transform_indices = @transform_1, window_bounds = array<i64: 32, 64>}, {pipeline_mode = #tpu.pipeline_mode<synchronous>, transform_indices = @transform_2, window_bounds = array<i64: 1, 64>}, {transform_indices = @transform_3, window_bounds = array<i64: 1, 256, 64>}]} {
    %c0 = arith.constant 0 : index
    %c0_0 = arith.constant 0 : index
    %c0_1 = arith.constant 0 : index
    %0 = vector.load %arg3[%c0, %c0_0, %c0_1] : memref<1x32x256xf32, #tpu.memory_space<vmem>>, vector<1x32x256xf32>
    %1 = vector.shape_cast %0 : vector<1x32x256xf32> to vector<32x256xf32>
    %c0_2 = arith.constant 0 : index
    %c0_3 = arith.constant 0 : index
    %2 = vector.load %arg4[%c0_2, %c0_3] : memref<32x64xf32, #tpu.memory_space<vmem>>, vector<32x64xf32>
    %cst = arith.constant dense<0.000000e+00> : vector<256x64xf32>
    %3 = tpu.matmul %1, %2, %cst {dimension_numbers = #tpu.dot_dimension_numbers<[0], [0], [1], [1], [0, 1, 1, 1], [], []>} : vector<32x256xf32>, vector<32x64xf32>, vector<256x64xf32> -> vector<256x64xf32>
    %c0_4 = arith.constant 0 : index
    %c0_5 = arith.constant 0 : index
    %4 = vector.load %arg5[%c0_4, %c0_5] : memref<1x64xf32, #tpu.memory_space<vmem>>, vector<1x64xf32>
    %5 = vector.broadcast %4 : vector<1x64xf32> to vector<256x64xf32>
    %6 = arith.addf %3, %5 : vector<256x64xf32>
    %c0_6 = arith.constant 0 : index
    %c0_7 = arith.constant 0 : index
    %c0_8 = arith.constant 0 : index
    %7 = vector.load %arg6[%c0_6, %c0_7, %c0_8] : memref<1x256x64xf32, #tpu.memory_space<vmem>>, vector<1x256x64xf32>
    %8 = vector.shape_cast %7 : vector<1x256x64xf32> to vector<256x64xf32>
    %9 = vector.shape_cast %6 : vector<256x64xf32> to vector<1x256x64xf32>
    tpu.vector_store %arg6[%c0_6, %c0_7, %c0_8], %9 {strides = array<i32>} : memref<1x256x64xf32, #tpu.memory_space<vmem>>, vector<1x256x64xf32>,
    return
  }
  func.func @transform_0(%arg0: i32, %arg1: i32, %arg2: i32) -> (i32, i32, i32) {
    %c0_i32 = arith.constant 0 : i32
    %c0_i32_0 = arith.constant 0 : i32
    return %arg0, %c0_i32, %arg2 : i32, i32, i32
  }
  func.func @transform_1(%arg0: i32, %arg1: i32, %arg2: i32) -> (i32, i32) {
    %c0_i32 = arith.constant 0 : i32
    %c0_i32_0 = arith.constant 0 : i32
    return %c0_i32, %arg1 : i32, i32
  }
  func.func @transform_2(%arg0: i32, %arg1: i32, %arg2: i32) -> (i32, i32) {
    %c0_i32 = arith.constant 0 : i32
    %c0_i32_0 = arith.constant 0 : i32
    return %c0_i32, %arg1 : i32, i32
  }
  func.func @transform_3(%arg0: i32, %arg1: i32, %arg2: i32) -> (i32, i32, i32) {
    %c0_i32 = arith.constant 0 : i32
    return %arg0, %arg2, %arg1 : i32, i32, i32
  }
}

</mosaic_0001>

<bundles_post_ra>
// kernel: mlp_forward.1
= control target key start
LH: loop header
LB: loop body
LE: loop exit
PB: predicated region body
PF: predicated region fallthrough
CT: control target
= control target key end

     0   :  { %s1038_s12 = smov 0   ;;  %s1040_s13 = smov 0   ;;  %s1222_s0 = inlined_call_operand.vmem [shape: f32[2,32,256], index: 0, kind: input, shape index: {}]   ;;  %s1223_s1 = inlined_call_operand.vmem [shape: f32[32,64], index: 1, kind: input, shape index: {}]   ;;  %s1224_s2 = inlined_call_operand.vmem [shape: f32[1,64], index: 2, kind: input, shape index: {}]   ;;  %s1225_s3 = inlined_call_operand.vmem [shape: f32[2,256,64], index: 3, kind: output, shape index: {}]  }
   0x1   :  { %s1042_s14 = smov 0  }
   0x2 LB: > { %s32_s15 = sadd.s32 1, %s1012_s13  ;;  %p827_p0 = scmp.ge.s32.totalorder %s1016_s14, 1  ;;  %s1016_s14 = sphi %s1042_s14, %s13_s14   ;;  %s1012_s13 = sphi %s1040_s13, %s1227_s13   ;;  %s1008_s12 = sphi %s1038_s12, %s1226_s12  }
   0x3   : > { %p34_p1 = scmp.ge.s32.totalorder %s32_s15, 2  ;;  %p184_p2 = scmp.lt.s32.totalorder %s1016_s14, 3 }
   0x5   : > { %s1229_s15 = smov (%p34_p1, %s32_s15), 0  ;;  %p185_p3 = pnand %p827_p0, %p184_p2 }
   0x6   : > { %p227_p4 = scmp.lt.s32.totalorder (!%p185_p3), %s1008_s12, 1 }
   0x7   : > { %188 = sbr.rel (%p185_p3) target bundleno = 402 (0x192), region = 32 }
   0xc   : > { %v267_v0 = vld [vmem:[%s1223_s1 + $0x18] sm:$0xff]  ;;  %v266_v1 = vld [vmem:[%s1223_s1 + $0x10] sm:$0xff]  ;;  %s1231_s12 = smov (!%p227_p4, %s1008_s12), 1  ;;  %v265_v2 = vld [vmem:[%s1223_s1 + $0x8] sm:$0xff]  ;;  %vm339_vm0 = vcmask 261120   ;;  %vm661_vm1 = vcmask 523264  }
   0xd   : > { %905 = vmatprep.subr.mxu0 %v267_v0  ;;  %961 = vmatprep.subr.mxu1 %v267_v0  ;;  %s867_s22 = sshll.u32 %s1231_s12, 6  ;;  %v264_v3 = vld [vmem:[%s1223_s1] sm:$0xff]  ;;  %s868_s28 = sshll.u32 %s1231_s12, 8 }
   0xe   : > { %906 = vmatpush3.msra.mxu0 %v267_v0  ;;  %965 = vmatpush3.msra.mxu1 %v267_v0  ;;  %s234_s25 = scalar_lea.vmem %s1222_s0, %s867_s22  ;;  %v1110_v44 = vld [vmem:[%s1224_s2] ss:$0 sm:$0xff]  ;;  %s1115_s6 = scalar_lea.vmem %s1225_s3, %s868_s28 }
   0xf   : > { %907 = vmatprep.subr.mxu0 %v266_v1  ;;  %962 = vmatprep.subr.mxu1 %v266_v1  ;;  %v257_v4 = vld [vmem:[%s234_s25 + $0x8] sm:$0xff]  ;;  %v256_v5 = vld [vmem:[%s234_s25] sm:$0xff]  ;;  %v259_v6 = vld [vmem:[%s234_s25 + $0x18] sm:$0xff] }
  0x10   : > { %908 = vmatpush3.msra.mxu0 %v266_v1  ;;  %966 = vmatpush3.msra.mxu1 %v266_v1  ;;  %v258_v7 = vld [vmem:[%s234_s25 + $0x10] sm:$0xff]  ;;  %v261_v8 = vld [vmem:[%s234_s25 + $0x28] sm:$0xff]  ;;  %v260_v9 = vld [vmem:[%s234_s25 + $0x20] sm:$0xff] }
  0x11   : > { %909 = vmatprep.subr.mxu0 %v265_v2  ;;  %963 = vmatprep.subr.mxu1 %v265_v2  ;;  %v263_v10 = vld [vmem:[%s234_s25 + $0x38] sm:$0xff]  ;;  %v262_v11 = vld [vmem:[%s234_s25 + $0x30] sm:$0xff] }
  0x12   : > { %910 = vmatpush3.msra.mxu0 %v265_v2  ;;  %967 = vmatpush3.msra.mxu1 %v265_v2 }
  0x13   : > { %307 = vxpose.xlu1.b32.start [1/4] (short) %v257_v4, 128  ;;  %275 = vxpose.xlu0.b32.start [1/4] (short) %v256_v5, 128 }
  0x14   : > { %911 = vmatprep.subr.mxu0 %v264_v3  ;;  %964 = vmatprep.subr.mxu1 %v264_v3 }
  0x15   : > { %912 = vmatpush3.msra.mxu0 %v264_v3  ;;  %968 = vmatpush3.msra.mxu1 %v264_v3 }
  0x17   : > { %308 = vxpose.xlu1.b32.cont [2/4] (short) %v259_v6, 128  ;;  %276 = vxpose.xlu0.b32.cont [2/4] (short) %v258_v7, 128 }
  0x1b   : > { %309 = vxpose.xlu1.b32.cont [3/4] (short) %v261_v8, 128  ;;  %277 = vxpose.xlu0.b32.cont [3/4] (short) %v260_v9, 128 }
  0x1f   : > { %310 = vxpose.xlu1.b32.end [4/4] (short) %v263_v10, 128  ;;  %278 = vxpose.xlu0.b32.end [4/4] (short) %v262_v11, 128 }
  0x8f   : > { %v323_v12 = vpop.trf.xlu1  ;;  %v291_v13 = vpop.trf.xlu0 }
  0x90   : > { %913 = vmatprep.mubr.msk.f32.mxu0 %vm339_vm0, %v291_v13  ;;  %937 = vmatprep.mubr.msk.f32.mxu1 %vm339_vm0, %v323_v12 }
  0x93   : > { %v324_v14 = vpop.trf.xlu1  ;;  %v292_v15 = vpop.trf.xlu0 }
  0x94   : > { %914 = vmatmul.mubr.msk.f32.vlgmr.msra.gmra.mxu0 %vm339_vm0, %v292_v15  ;;  %938 = vmatmul.mubr.msk.f32.vlgmr.msra.gmra.mxu1 %vm339_vm0, %v324_v14 }
  0x97   : > { %v325_v16 = vpop.trf.xlu1  ;;  %v293_v17 = vpop.trf.xlu0 }
  0x98   : > { %916 = vmatprep.mubr.msk.f32.mxu0 %vm339_vm0, %v293_v17  ;;  %940 = vmatprep.mubr.msk.f32.mxu1 %vm339_vm0, %v325_v16 }
  0x9b   : > { %v326_v18 = vpop.trf.xlu1  ;;  %v294_v19 = vpop.trf.xlu0 }
  0x9c   : > { %917 = vmatmul.mubr.msk.f32.gmra.mxu0 %vm339_vm0, %v294_v19  ;;  %941 = vmatmul.mubr.msk.f32.gmra.mxu1 %vm339_vm0, %v326_v18 }
  0x9f   : > { %v327_v20 = vpop.trf.xlu1  ;;  %v295_v21 = vpop.trf.xlu0 }
  0xa0   : > { %919 = vmatprep.mubr.msk.f32.mxu0 %vm339_vm0, %v295_v21  ;;  %943 = vmatprep.mubr.msk.f32.mxu1 %vm339_vm0, %v327_v20 }
  0xa3   : > { %v328_v22 = vpop.trf.xlu1  ;;  %v296_v23 = vpop.trf.xlu0 }
  0xa4   : > { %920 = vmatmul.mubr.msk.f32.gmra.mxu0 %vm339_vm0, %v296_v23  ;;  %944 = vmatmul.mubr.msk.f32.gmra.mxu1 %vm339_vm0, %v328_v22 }
  0xa7   : > { %v329_v24 = vpop.trf.xlu1  ;;  %v297_v25 = vpop.trf.xlu0 }
  0xa8   : > { %922 = vmatprep.mubr.msk.f32.mxu0 %vm339_vm0, %v297_v25  ;;  %946 = vmatprep.mubr.msk.f32.mxu1 %vm339_vm0, %v329_v24 }
  0xab   : > { %v330_v26 = vpop.trf.xlu1  ;;  %v298_v27 = vpop.trf.xlu0 }
  0xac   : > { %923 = vmatmul.mubr.msk.f32.gmra.mxu0 %vm339_vm0, %v298_v27  ;;  %947 = vmatmul.mubr.msk.f32.gmra.mxu1 %vm339_vm0, %v330_v26 }
  0xaf   : > { %v331_v28 = vpop.trf.xlu1  ;;  %v299_v29 = vpop.trf.xlu0 }
  0xb0   : > { %925 = vmatprep.mubr.msk.f32.mxu0 %vm339_vm0, %v299_v29  ;;  %949 = vmatprep.mubr.msk.f32.mxu1 %vm339_vm0, %v331_v28 }
  0xb3   : > { %v332_v30 = vpop.trf.xlu1  ;;  %v300_v31 = vpop.trf.xlu0 }
  0xb4   : > { %926 = vmatmul.mubr.msk.f32.gmra.mxu0 %vm339_vm0, %v300_v31  ;;  %950 = vmatmul.mubr.msk.f32.gmra.mxu1 %vm339_vm0, %v332_v30 }
  0xb7   : > { %v333_v32 = vpop.trf.xlu1  ;;  %v301_v33 = vpop.trf.xlu0 }
  0xb8   : > { %928 = vmatprep.mubr.msk.f32.mxu0 %vm339_vm0, %v301_v33  ;;  %952 = vmatprep.mubr.msk.f32.mxu1 %vm339_vm0, %v333_v32 }
  0xbb   : > { %v334_v34 = vpop.trf.xlu1  ;;  %v302_v35 = vpop.trf.xlu0 }
  0xbc   : > { %929 = vmatmul.mubr.msk.f32.gmra.mxu0 %vm339_vm0, %v302_v35  ;;  %953 = vmatmul.mubr.msk.f32.gmra.mxu1 %vm339_vm0, %v334_v34 }
  0xbf   : > { %v335_v36 = vpop.trf.xlu1  ;;  %v303_v37 = vpop.trf.xlu0 }
  0xc0   : > { %931 = vmatprep.mubr.msk.f32.mxu0 %vm339_vm0, %v303_v37  ;;  %955 = vmatprep.mubr.msk.f32.mxu1 %vm339_vm0, %v335_v36 }
  0xc3   : > { %v336_v38 = vpop.trf.xlu1  ;;  %v304_v39 = vpop.trf.xlu0 }
  0xc4   : > { %932 = vmatmul.mubr.msk.f32.gmra.mxu0 %vm339_vm0, %v304_v39  ;;  %956 = vmatmul.mubr.msk.f32.gmra.mxu1 %vm339_vm0, %v336_v38 }
  0xc7   : > { %v337_v40 = vpop.trf.xlu1  ;;  %v305_v41 = vpop.trf.xlu0 }
  0xc8   : > { %934 = vmatprep.mubr.msk.f32.mxu0 %vm339_vm0, %v305_v41  ;;  %958 = vmatprep.mubr.msk.f32.mxu1 %vm339_vm0, %v337_v40 }
  0xcb   : > { %v338_v42 = vpop.trf.xlu1  ;;  %v306_v43 = vpop.trf.xlu0 }
  0xcc   : > { %935 = vmatmul.mubr.msk.f32.gmra.mxu0 %vm339_vm0, %v306_v43  ;;  %959 = vmatmul.mubr.msk.f32.gmra.mxu1 %vm339_vm0, %v338_v42 }
 0x154   : > { %v915_v45 = vpop.f32.mrf.mxu0  ;;  %v939_v46 = vpop.f32.mrf.mxu1 }
 0x155   : > { %v508_v47 = vadd.f32 %v915_v45, %v1110_v44  ;;  %v588_v48 = vadd.f32 %v939_v46, %v1110_v44 }
 0x156   : > { %v502_v49 = vpop.f32.mrf.mxu0  ;;  %v582_v50 = vpop.f32.mrf.mxu1 }
 0x157   : > { %663 = vst.msk [vmem:[%s1115_s6 + $0x8] sm:$0xff] %vm661_vm1, %v508_v47  ;;  %679 = vst.msk [vmem:[%s1115_s6 + $0x88] sm:$0xff] %vm661_vm1, %v588_v48  ;;  %v503_v51 = vadd.f32 %v1110_v44, %v502_v49  ;;  %v583_v52 = vadd.f32 %v1110_v44, %v582_v50 }
 0x159   : > { %662 = vst.msk [vmem:[%s1115_s6] sm:$0xff] %vm661_vm1, %v503_v51  ;;  %678 = vst.msk [vmem:[%s1115_s6 + $0x80] sm:$0xff] %vm661_vm1, %v583_v52 }
 0x15c   : > { %v918_v53 = vpop.f32.mrf.mxu0  ;;  %v942_v54 = vpop.f32.mrf.mxu1 }
 0x15d   : > { %v518_v55 = vadd.f32 %v918_v53, %v1110_v44  ;;  %v598_v56 = vadd.f32 %v942_v54, %v1110_v44 }
 0x15e   : > { %v512_v57 = vpop.f32.mrf.mxu0  ;;  %v592_v58 = vpop.f32.mrf.mxu1 }
 0x15f   : > { %665 = vst.msk [vmem:[%s1115_s6 + $0x18] sm:$0xff] %vm661_vm1, %v518_v55  ;;  %681 = vst.msk [vmem:[%s1115_s6 + $0x98] sm:$0xff] %vm661_vm1, %v598_v56  ;;  %v513_v59 = vadd.f32 %v1110_v44, %v512_v57  ;;  %v593_v60 = vadd.f32 %v1110_v44, %v592_v58 }
 0x161   : > { %664 = vst.msk [vmem:[%s1115_s6 + $0x10] sm:$0xff] %vm661_vm1, %v513_v59  ;;  %680 = vst.msk [vmem:[%s1115_s6 + $0x90] sm:$0xff] %vm661_vm1, %v593_v60 }
 0x164   : > { %v921_v61 = vpop.f32.mrf.mxu0  ;;  %v945_v62 = vpop.f32.mrf.mxu1 }
 0x165   : > { %v528_v63 = vadd.f32 %v921_v61, %v1110_v44  ;;  %v608_v0 = vadd.f32 %v945_v62, %v1110_v44 }
 0x166   : > { %v522_v1 = vpop.f32.mrf.mxu0  ;;  %v602_v2 = vpop.f32.mrf.mxu1 }
 0x167   : > { %667 = vst.msk [vmem:[%s1115_s6 + $0x28] sm:$0xff] %vm661_vm1, %v528_v63  ;;  %683 = vst.msk [vmem:[%s1115_s6 + $0xa8] sm:$0xff] %vm661_vm1, %v608_v0  ;;  %v523_v3 = vadd.f32 %v1110_v44, %v522_v1  ;;  %v603_v4 = vadd.f32 %v1110_v44, %v602_v2 }
 0x169   : > { %666 = vst.msk [vmem:[%s1115_s6 + $0x20] sm:$0xff] %vm661_vm1, %v523_v3  ;;  %682 = vst.msk [vmem:[%s1115_s6 + $0xa0] sm:$0xff] %vm661_vm1, %v603_v4 }
 0x16c   : > { %v924_v5 = vpop.f32.mrf.mxu0  ;;  %v948_v6 = vpop.f32.mrf.mxu1 }
 0x16d   : > { %v538_v7 = vadd.f32 %v924_v5, %v1110_v44  ;;  %v618_v8 = vadd.f32 %v948_v6, %v1110_v44 }
 0x16e   : > { %v532_v9 = vpop.f32.mrf.mxu0  ;;  %v612_v10 = vpop.f32.mrf.mxu1 }
 0x16f   : > { %669 = vst.msk [vmem:[%s1115_s6 + $0x38] sm:$0xff] %vm661_vm1, %v538_v7  ;;  %685 = vst.msk [vmem:[%s1115_s6 + $0xb8] sm:$0xff] %vm661_vm1, %v618_v8  ;;  %v533_v11 = vadd.f32 %v1110_v44, %v532_v9  ;;  %v613_v12 = vadd.f32 %v1110_v44, %v612_v10 }
 0x171   : > { %668 = vst.msk [vmem:[%s1115_s6 + $0x30] sm:$0xff] %vm661_vm1, %v533_v11  ;;  %684 = vst.msk [vmem:[%s1115_s6 + $0xb0] sm:$0xff] %vm661_vm1, %v613_v12 }
 0x174   : > { %v927_v13 = vpop.f32.mrf.mxu0  ;;  %v951_v14 = vpop.f32.mrf.mxu1 }
 0x175   : > { %v548_v15 = vadd.f32 %v927_v13, %v1110_v44  ;;  %v628_v16 = vadd.f32 %v951_v14, %v1110_v44 }
 0x176   : > { %v542_v17 = vpop.f32.mrf.mxu0  ;;  %v622_v18 = vpop.f32.mrf.mxu1 }
 0x177   : > { %671 = vst.msk [vmem:[%s1115_s6 + $0x48] sm:$0xff] %vm661_vm1, %v548_v15  ;;  %687 = vst.msk [vmem:[%s1115_s6 + $0xc8] sm:$0xff] %vm661_vm1, %v628_v16  ;;  %v543_v19 = vadd.f32 %v1110_v44, %v542_v17  ;;  %v623_v20 = vadd.f32 %v1110_v44, %v622_v18 }
 0x179   : > { %670 = vst.msk [vmem:[%s1115_s6 + $0x40] sm:$0xff] %vm661_vm1, %v543_v19  ;;  %686 = vst.msk [vmem:[%s1115_s6 + $0xc0] sm:$0xff] %vm661_vm1, %v623_v20 }
 0x17c   : > { %v930_v21 = vpop.f32.mrf.mxu0  ;;  %v954_v22 = vpop.f32.mrf.mxu1 }
 0x17d   : > { %v558_v23 = vadd.f32 %v930_v21, %v1110_v44  ;;  %v638_v24 = vadd.f32 %v954_v22, %v1110_v44 }
 0x17e   : > { %v552_v25 = vpop.f32.mrf.mxu0  ;;  %v632_v26 = vpop.f32.mrf.mxu1 }
 0x17f   : > { %673 = vst.msk [vmem:[%s1115_s6 + $0x58] sm:$0xff] %vm661_vm1, %v558_v23  ;;  %689 = vst.msk [vmem:[%s1115_s6 + $0xd8] sm:$0xff] %vm661_vm1, %v638_v24  ;;  %v553_v27 = vadd.f32 %v1110_v44, %v552_v25  ;;  %v633_v28 = vadd.f32 %v1110_v44, %v632_v26 }
 0x181   : > { %672 = vst.msk [vmem:[%s1115_s6 + $0x50] sm:$0xff] %vm661_vm1, %v553_v27  ;;  %688 = vst.msk [vmem:[%s1115_s6 + $0xd0] sm:$0xff] %vm661_vm1, %v633_v28 }
 0x184   : > { %v933_v29 = vpop.f32.mrf.mxu0  ;;  %v957_v30 = vpop.f32.mrf.mxu1 }
 0x185   : > { %v568_v31 = vadd.f32 %v933_v29, %v1110_v44  ;;  %v648_v32 = vadd.f32 %v957_v30, %v1110_v44 }
 0x186   : > { %v562_v33 = vpop.f32.mrf.mxu0  ;;  %v642_v34 = vpop.f32.mrf.mxu1 }
 0x187   : > { %675 = vst.msk [vmem:[%s1115_s6 + $0x68] sm:$0xff] %vm661_vm1, %v568_v31  ;;  %691 = vst.msk [vmem:[%s1115_s6 + $0xe8] sm:$0xff] %vm661_vm1, %v648_v32  ;;  %v563_v35 = vadd.f32 %v1110_v44, %v562_v33  ;;  %v643_v36 = vadd.f32 %v1110_v44, %v642_v34 }
 0x189   : > { %674 = vst.msk [vmem:[%s1115_s6 + $0x60] sm:$0xff] %vm661_vm1, %v563_v35  ;;  %690 = vst.msk [vmem:[%s1115_s6 + $0xe0] sm:$0xff] %vm661_vm1, %v643_v36 }
 0x18c   : > { %v936_v37 = vpop.f32.mrf.mxu0  ;;  %v960_v38 = vpop.f32.mrf.mxu1 }
 0x18d   : > { %v578_v39 = vadd.f32 %v936_v37, %v1110_v44  ;;  %v658_v40 = vadd.f32 %v960_v38, %v1110_v44 }
 0x18e   : > { %v572_v41 = vpop.f32.mrf.mxu0  ;;  %v652_v42 = vpop.f32.mrf.mxu1 }
 0x18f   : > { %677 = vst.msk [vmem:[%s1115_s6 + $0x78] sm:$0xff] %vm661_vm1, %v578_v39  ;;  %693 = vst.msk [vmem:[%s1115_s6 + $0xf8] sm:$0xff] %vm661_vm1, %v658_v40  ;;  %v573_v43 = vadd.f32 %v1110_v44, %v572_v41  ;;  %v653_v45 = vadd.f32 %v1110_v44, %v652_v42 }
 0x191   : > { %676 = vst.msk [vmem:[%s1115_s6 + $0x70] sm:$0xff] %vm661_vm1, %v573_v43  ;;  %692 = vst.msk [vmem:[%s1115_s6 + $0xf0] sm:$0xff] %vm661_vm1, %v653_v45 }
 0x192 PF: > { %s13_s14 = sadd.s32 1, %s1016_s14   ;;  %s1226_s12 = smov %s1012_s13 }
 0x193   : > { %p10_p5 = scmp.ge.s32.totalorder %s13_s14, 4   ;;  %s1227_s13 = smov %s1229_s15 }
 0x195   :  { %12 = sbr.rel (!%p10_p5) target bundleno = 2 (0x2), region = 68 }

</bundles_post_ra>
